<compile_context>
chip_gen: v6e
topology: v6e:2x2x1
jax: 0.10.0
libtpu: 0.0.40
codegen_flags: <defaults>
</compile_context>

<pallas_src>
import jax
import jax.numpy as jnp
import numpy as np
from jax.experimental import pallas as pl
from jax.experimental.pallas import tpu as pltpu


def _pick_row_tile(hwo, max_tile=512):
    """Largest row tile <= max_tile that keeps blocks (8,128)-legal."""
    if hwo <= max_tile:
        return hwo                      # block == full dim is always legal
    for t in range(max_tile, 7, -1):    # prefer multiple-of-8 divisors
        if hwo % t == 0 and t % 8 == 0:
            return t
    return hwo                          # fallback: whole row dim resident


def _conv_matmul_kernel(x_ref, w_ref, b_ref, o_ref, acc_ref):
    """One (rows, K) x (K, Cout) MXU matmul per grid step; temporal taps are the
    innermost grid axis, accumulated in an f32 VMEM scratch accumulator."""
    kt = pl.program_id(3)

    @pl.when(kt == 0)
    def _init():
        acc_ref[...] = jnp.zeros_like(acc_ref)

    # x block is already 2-D (rows, K); weights are VMEM-resident (kT, K, Cout).
    acc_ref[...] += jnp.dot(x_ref[0, 0], w_ref[kt],
                            preferred_element_type=jnp.float32)

    @pl.when(kt == pl.num_programs(3) - 1)
    def _finish():
        o_ref[0, 0] = (acc_ref[...] + b_ref[...]).astype(o_ref.dtype)


def _conv3d_ndhwc(x, w, b, *, stride, padding, max_row_tile=512):
    """3-D cross-correlation + bias with PyTorch nn.Conv3d semantics, NDHWC.

    x: (N, T, H, W, Cin) f32   w: (Cout, Cin, kT, kH, kW) f32   b: (Cout,) f32
    returns (N, To, Ho, Wo, Cout) f32
    """
    sT, sH, sW = stride
    pT, pH, pW = padding
    N, T, H, W, Cin = x.shape
    Cout, _, kT, kH, kW = w.shape

    x_pad = jnp.pad(x, ((0, 0), (pT, pT), (pH, pH), (pW, pW), (0, 0)))
    Tp, Hp, Wp = T + 2 * pT, H + 2 * pH, W + 2 * pW
    To = (Tp - kT) // sT + 1
    Ho = (Hp - kH) // sH + 1
    Wo = (Wp - kW) // sW + 1
    HWo = Ho * Wo

    # Fold kernel taps into the contraction (lane) dim.  Spatial stride is
    # applied by the strided slices here; temporal stride either here (full
    # fold) or via the index_map (temporal grid reduction).
    k_spatial = kH * kW * Cin
    fold_t = (k_spatial < 128) and (kT * k_spatial <= 1024)

    cols = []
    if fold_t:
        K = kT * k_spatial
        kT_grid = 1
        t_step = 1                       # temporal stride already folded in
        for kt in range(kT):
            for kh in range(kH):
                for kw in range(kW):
                    cols.append(jax.lax.slice(
                        x_pad,
                        (0, kt, kh, kw, 0),
                        (N, kt + (To - 1) * sT + 1,
                         kh + (Ho - 1) * sH + 1,
                         kw + (Wo - 1) * sW + 1, Cin),
                        (1, sT, sH, sW, 1)))
        x_col = jnp.concatenate(cols, axis=-1).reshape(N, To, HWo, K)
        w_k = jnp.transpose(w, (2, 3, 4, 1, 0)).reshape(1, K, Cout)
    else:
        K = k_spatial
        kT_grid = kT
        t_step = sT                      # temporal stride via index_map
        for kh in range(kH):
            for kw in range(kW):
                cols.append(jax.lax.slice(
                    x_pad,
                    (0, 0, kh, kw, 0),
                    (N, Tp,
                     kh + (Ho - 1) * sH + 1,
                     kw + (Wo - 1) * sW + 1, Cin),
                    (1, 1, sH, sW, 1)))
        x_col = jnp.concatenate(cols, axis=-1).reshape(N, Tp, HWo, K)
        w_k = jnp.transpose(w, (2, 3, 4, 1, 0)).reshape(kT, K, Cout)

    b2 = b.reshape(1, Cout)
    tm = _pick_row_tile(HWo, max_row_tile)
    grid = (N, To, HWo // tm, kT_grid)

    out = pl.pallas_call(
        _conv_matmul_kernel,
        out_shape=jax.ShapeDtypeStruct((N, To, HWo, Cout), jnp.float32),
        grid_spec=pltpu.PrefetchScalarGridSpec(
            num_scalar_prefetch=0,
            grid=grid,
            in_specs=[
                # im2col'd activations: lhs block is already 2-D (tm, K).
                pl.BlockSpec((1, 1, tm, K),
                             lambda n, t, m, kt: (n, t * t_step + kt, m, 0)),
                # Weights: constant block index -> VMEM-resident across grid.
                pl.BlockSpec((kT_grid, K, Cout),
                             lambda n, t, m, kt: (0, 0, 0)),
                pl.BlockSpec((1, Cout), lambda n, t, m, kt: (0, 0)),
            ],
            out_specs=pl.BlockSpec((1, 1, tm, Cout),
                                   lambda n, t, m, kt: (n, t, m, 0)),
            scratch_shapes=[pltpu.VMEM((tm, Cout), jnp.float32)],
        ),
        compiler_params=pltpu.CompilerParams(
            dimension_semantics=("parallel", "parallel", "parallel", "arbitrary"),
            vmem_limit_bytes=32 * 1024 * 1024),
    )(x_col, w_k, b2)

    return out.reshape(N, To, Ho, Wo, Cout)


def _init_conv3d(key, cout, cin, kt, kh, kw):
    # Deterministic PyTorch-style init: U(-1/sqrt(fan_in), 1/sqrt(fan_in)).
    k1, k2 = jax.random.split(key)
    fan_in = cin * kt * kh * kw
    bound = fan_in ** -0.5
    w = jax.random.uniform(k1, (cout, cin, kt, kh, kw), jnp.float32, -bound, bound)
    b = jax.random.uniform(k2, (cout,), jnp.float32, -bound, bound)
    return w, b


def init_inception_params(key, kernal_size, in_channel):
    kH, kW = kernal_size
    keys = jax.random.split(key, 5)
    return {
        "branch1":  _init_conv3d(keys[0], 32, in_channel, 5, kH, kW),
        "branch2a": _init_conv3d(keys[1], 64, in_channel, 5, kH, kW),
        "branch2b": _init_conv3d(keys[2], 64, 64, 9, kH, kW),
        "branch3a": _init_conv3d(keys[3], 64, in_channel, 5, kH, kW),
        "branch3b": _init_conv3d(keys[4], 64, 64, 13, kH, kW),
    }


def inception_layer_concat(x, params, kernal_size, stride):
    """Pallas implementation of InceptionLayerConcat.forward (NCDHW in/out)."""
    pX = kernal_size[0] // 2
    pY = kernal_size[1] // 2
    stride = tuple(stride)
    w1, b1 = params["branch1"]
    w2a, b2a = params["branch2a"]
    w2b, b2b = params["branch2b"]
    w3a, b3a = params["branch3a"]
    w3b, b3b = params["branch3b"]

    x_cl = jnp.transpose(x, (0, 2, 3, 4, 1))            # NCDHW -> NDHWC (once)

    if stride == (1, 1, 1):
        # Fuse all three stage-1 convs (same kT / padding / stride): one x read,
        # one pallas_call, Cout = 160 (lane-dense stores).
        w_s1 = jnp.concatenate((w1, w2a, w3a), axis=0)
        b_s1 = jnp.concatenate((b1, b2a, b3a), axis=0)
        s1 = _conv3d_ndhwc(x_cl, w_s1, b_s1, stride=(1, 1, 1), padding=(2, pX, pY))
        br1, b2_in, b3_in = s1[..., :32], s1[..., 32:96], s1[..., 96:]
    else:
        # branch2a / branch3a are always stride-1 in the reference module; fuse
        # those two (Cout = 128).  branch1 runs with its true stride applied in
        # the fold / index_map (no compute-and-discard subsampling).
        w_s23 = jnp.concatenate((w2a, w3a), axis=0)
        b_s23 = jnp.concatenate((b2a, b3a), axis=0)
        s23 = _conv3d_ndhwc(x_cl, w_s23, b_s23, stride=(1, 1, 1), padding=(2, pX, pY))
        b2_in, b3_in = s23[..., :64], s23[..., 64:]
        br1 = _conv3d_ndhwc(x_cl, w1, b1, stride=stride, padding=(2, pX, pY))

    br2 = _conv3d_ndhwc(b2_in, w2b, b2b, stride=stride, padding=(4, pX, pY))
    br3 = _conv3d_ndhwc(b3_in, w3b, b3b, stride=stride, padding=(6, pX, pY))

    out_cl = jnp.concatenate((br1, br2, br3), axis=-1)  # lane-dim channel concat
    return jnp.transpose(out_cl, (0, 4, 1, 2, 3))       # NDHWC -> NCDHW (once)


# ----------------------------- reference (plain JAX) -----------------------------

def _conv3d_ref(x, w, b, *, stride, padding):
    out = jax.lax.conv_general_dilated(
        x, w, window_strides=stride,
        padding=[(p, p) for p in padding],
        dimension_numbers=("NCDHW", "OIDHW", "NCDHW"))
    return out + b.reshape(1, -1, 1, 1, 1)


def inception_ref(x, params, kernal_size, stride):
    pX = kernal_size[0] // 2
    pY = kernal_size[1] // 2
    w1, b1 = params["branch1"]
    w2a, b2a = params["branch2a"]
    w2b, b2b = params["branch2b"]
    w3a, b3a = params["branch3a"]
    w3b, b3b = params["branch3b"]
    br1 = _conv3d_ref(x, w1, b1, stride=stride, padding=(2, pX, pY))
    br2 = _conv3d_ref(x, w2a, b2a, stride=(1, 1, 1), padding=(2, pX, pY))
    br2 = _conv3d_ref(br2, w2b, b2b, stride=stride, padding=(4, pX, pY))
    br3 = _conv3d_ref(x, w3a, b3a, stride=(1, 1, 1), padding=(2, pX, pY))
    br3 = _conv3d_ref(br3, w3b, b3b, stride=stride, padding=(6, pX, pY))
    return jnp.concatenate((br1, br2, br3), axis=1)


if __name__ == "__main__":
    kernal_size = (3, 3)
    in_channel = 4
    stride = (1, 1, 1)

    key = jax.random.PRNGKey(0)
    kx, kp = jax.random.split(key)
    # x: (N, C, T, H, W) — PyTorch NCDHW convention for Conv3d.
    x = jax.random.normal(kx, (2, in_channel, 8, 8, 8), dtype=jnp.float32)
    params = init_inception_params(kp, kernal_size, in_channel)

    out = jax.block_until_ready(
        inception_layer_concat(x, params, kernal_size, stride))
    assert out.shape == (2, 32 + 64 + 64, 8, 8, 8), out.shape

    ref = jax.block_until_ready(inception_ref(x, params, kernal_size, stride))
    np.testing.assert_allclose(np.asarray(out), np.asarray(ref), rtol=3e-4, atol=3e-4)

    print("KERNEL_OK")
</pallas_src>

<mosaic_0001>
module attributes {stable_mosaic.version = 11 : i64} {
  func.func @_conv_matmul_kernel(%arg0: i32, %arg1: i32, %arg2: i32, %arg3: i32, %arg4: memref<1x1x64x180xf32, #tpu.memory_space<vmem>>, %arg5: memref<1x180x160xf32, #tpu.memory_space<vmem>>, %arg6: memref<1x160xf32, #tpu.memory_space<vmem>>, %arg7: memref<1x1x64x160xf32, #tpu.memory_space<vmem>>, %arg8: memref<64x160xf32, #tpu.memory_space<vmem>>) attributes {dimension_semantics = [#tpu.dimension_semantics<parallel>, #tpu.dimension_semantics<parallel>, #tpu.dimension_semantics<parallel>, #tpu.dimension_semantics<arbitrary>], iteration_bounds = array<i64: 2, 8, 1, 1>, scalar_prefetch = 0 : i64, scratch_operands = 1 : i64, tpu.core_type = #tpu.core_type<tc>, window_params = [{transform_indices = @transform_0, window_bounds = array<i64: 1, 1, 64, 180>}, {pipeline_mode = #tpu.pipeline_mode<synchronous>, transform_indices = @transform_1, window_bounds = array<i64: 1, 180, 160>}, {pipeline_mode = #tpu.pipeline_mode<synchronous>, transform_indices = @transform_2, window_bounds = array<i64: 1, 160>}, {transform_indices = @transform_3, window_bounds = array<i64: 1, 1, 64, 160>}]} {
    %c0_i32 = arith.constant 0 : i32
    %0 = arith.cmpi eq, %arg3, %c0_i32 : i32
    %1 = arith.extui %0 : i1 to i32
    %c0_i32_0 = arith.constant 0 : i32
    %2 = arith.cmpi ne, %1, %c0_i32_0 : i32
    scf.if %2 {
      %cst_12 = arith.constant 0.000000e+00 : f32
      %15 = vector.broadcast %cst_12 : f32 to vector<64x160xf32>
      %c0_13 = arith.constant 0 : index
      %c0_14 = arith.constant 0 : index
      %16 = vector.load %arg8[%c0_13, %c0_14] : memref<64x160xf32, #tpu.memory_space<vmem>>, vector<64x160xf32>
      tpu.vector_store %arg8[%c0_13, %c0_14], %15 {strides = array<i32>} : memref<64x160xf32, #tpu.memory_space<vmem>>, vector<64x160xf32>,
    } else {
    }
    %c0 = arith.constant 0 : index
    %c0_1 = arith.constant 0 : index
    %3 = vector.load %arg8[%c0, %c0_1] : memref<64x160xf32, #tpu.memory_space<vmem>>, vector<64x160xf32>
    %c0_2 = arith.constant 0 : index
    %c0_3 = arith.constant 0 : index
    %c0_4 = arith.constant 0 : index
    %c0_5 = arith.constant 0 : index
    %4 = vector.load %arg4[%c0_2, %c0_3, %c0_4, %c0_5] : memref<1x1x64x180xf32, #tpu.memory_space<vmem>>, vector<1x1x64x180xf32>
    %5 = vector.shape_cast %4 : vector<1x1x64x180xf32> to vector<64x180xf32>
    %6 = arith.index_cast %arg3 : i32 to index
    %c0_6 = arith.constant 0 : index
    %c0_7 = arith.constant 0 : index
    %7 = vector.load %arg5[%6, %c0_6, %c0_7] : memref<1x180x160xf32, #tpu.memory_space<vmem>>, vector<1x180x160xf32>
    %8 = vector.shape_cast %7 : vector<1x180x160xf32> to vector<180x160xf32>
    %cst = arith.constant dense<0.000000e+00> : vector<64x160xf32>
    %9 = tpu.matmul %5, %8, %cst {dimension_numbers = #tpu.dot_dimension_numbers<[1], [0], [0], [1], [0, 0, 1, 1], [], []>} : vector<64x180xf32>, vector<180x160xf32>, vector<64x160xf32> -> vector<64x160xf32>
    %10 = arith.addf %3, %9 : vector<64x160xf32>
    %c0_8 = arith.constant 0 : index
    %c0_9 = arith.constant 0 : index
    %11 = vector.load %arg8[%c0_8, %c0_9] : memref<64x160xf32, #tpu.memory_space<vmem>>, vector<64x160xf32>
    tpu.vector_store %arg8[%c0_8, %c0_9], %10 {strides = array<i32>} : memref<64x160xf32, #tpu.memory_space<vmem>>, vector<64x160xf32>,
    %c0_i32_10 = arith.constant 0 : i32
    %12 = arith.cmpi eq, %arg3, %c0_i32_10 : i32
    %13 = arith.extui %12 : i1 to i32
    %c0_i32_11 = arith.constant 0 : i32
    %14 = arith.cmpi ne, %13, %c0_i32_11 : i32
    scf.if %14 {
      %c0_12 = arith.constant 0 : index
      %c0_13 = arith.constant 0 : index
      %15 = vector.load %arg8[%c0_12, %c0_13] : memref<64x160xf32, #tpu.memory_space<vmem>>, vector<64x160xf32>
      %c0_14 = arith.constant 0 : index
      %c0_15 = arith.constant 0 : index
      %16 = vector.load %arg6[%c0_14, %c0_15] : memref<1x160xf32, #tpu.memory_space<vmem>>, vector<1x160xf32>
      %17 = vector.broadcast %16 : vector<1x160xf32> to vector<64x160xf32>
      %18 = arith.addf %15, %17 : vector<64x160xf32>
      %c0_16 = arith.constant 0 : index
      %c0_17 = arith.constant 0 : index
      %c0_18 = arith.constant 0 : index
      %c0_19 = arith.constant 0 : index
      %19 = vector.load %arg7[%c0_16, %c0_17, %c0_18, %c0_19] : memref<1x1x64x160xf32, #tpu.memory_space<vmem>>, vector<1x1x64x160xf32>
      %20 = vector.shape_cast %19 : vector<1x1x64x160xf32> to vector<64x160xf32>
      %21 = vector.shape_cast %18 : vector<64x160xf32> to vector<1x1x64x160xf32>
      tpu.vector_store %arg7[%c0_16, %c0_17, %c0_18, %c0_19], %21 {strides = array<i32>} : memref<1x1x64x160xf32, #tpu.memory_space<vmem>>, vector<1x1x64x160xf32>,
    } else {
    }
    return
  }
  func.func @transform_0(%arg0: i32, %arg1: i32, %arg2: i32, %arg3: i32) -> (i32, i32, i32, i32) {
    %c1_i32 = arith.constant 1 : i32
    %0 = arith.muli %arg1, %c1_i32 : i32
    %1 = arith.addi %0, %arg3 : i32
    %c0_i32 = arith.constant 0 : i32
    %c0_i32_0 = arith.constant 0 : i32
    return %arg0, %1, %arg2, %c0_i32 : i32, i32, i32, i32
  }
  func.func @transform_1(%arg0: i32, %arg1: i32, %arg2: i32, %arg3: i32) -> (i32, i32, i32) {
    %c0_i32 = arith.constant 0 : i32
    %c0_i32_0 = arith.constant 0 : i32
    %c0_i32_1 = arith.constant 0 : i32
    %c0_i32_2 = arith.constant 0 : i32
    return %c0_i32, %c0_i32_0, %c0_i32_1 : i32, i32, i32
  }
  func.func @transform_2(%arg0: i32, %arg1: i32, %arg2: i32, %arg3: i32) -> (i32, i32) {
    %c0_i32 = arith.constant 0 : i32
    %c0_i32_0 = arith.constant 0 : i32
    %c0_i32_1 = arith.constant 0 : i32
    return %c0_i32, %c0_i32_0 : i32, i32
  }
  func.func @transform_3(%arg0: i32, %arg1: i32, %arg2: i32, %arg3: i32) -> (i32, i32, i32, i32) {
    %c0_i32 = arith.constant 0 : i32
    %c0_i32_0 = arith.constant 0 : i32
    return %arg0, %arg1, %arg2, %c0_i32 : i32, i32, i32, i32
  }
}

</mosaic_0001>

<bundles_post_ra>
// kernel: tpu_custom_call.1
= control target key start
LH: loop header
LB: loop body
LE: loop exit
PB: predicated region body
PF: predicated region fallthrough
CT: control target
= control target key end

     0   :  { %8 = vsyncpa [#allocation4], 0  ;;  %s1388_s0 = inlined_call_operand.hbm [shape: f32[2,8,64,180], index: 0, kind: input, shape index: {}]   ;;  %s1389_s1 = inlined_call_operand.vmem [shape: f32[1,180,160], index: 1, kind: input, shape index: {}]   ;;  %s1390_s2 = inlined_call_operand.vmem [shape: f32[1,160], index: 2, kind: input, shape index: {}]   ;;  %s1391_s3 = inlined_call_operand.hbm [shape: f32[2,8,64,160], index: 3, kind: output, shape index: {}]  }
   0x1   :  { %10 = vsyncpa [#allocation4 + $0x1], 0 }
   0x2   :  { %11 = vsyncpa [#allocation5], 0 }
   0x3   :  { %13 = vsyncpa [#allocation5 + $0x1], 0  ;;  %s1008_s12 = smov 0   ;;  %s1010_s13 = smov 0  }
   0x4   :  { %s1012_s14 = smov 0   ;;  %s1014_s15 = smov 0  }
   0x5   :  { %s1016_s16 = smov 0   ;;  %s1018_s17 = smov 0  }
   0x6   :  { %s1020_s18 = smov 0   ;;  %s1022_s19 = smov 0  }
   0x7 LB: > { %s699_s20 = sadd.s32 4294967295, %s979_s19   ;;  %s700_s21 = sadd.s32 4294967294, %s979_s19   ;;  %s979_s19 = sphi %s1022_s19, %s19_s19   ;;  %s975_s18 = sphi %s1020_s18, %s1409_s18   ;;  %s971_s17 = sphi %s1018_s17, %s1408_s17   ;;  %s967_s16 = sphi %s1016_s16, %s1407_s16   ;;  %s963_s15 = sphi %s1014_s15, %s1406_s15   ;;  %s959_s14 = sphi %s1012_s14, %s1405_s14   ;;  %s955_s13 = sphi %s1010_s13, %s1404_s13   ;;  %s951_s12 = sphi %s1008_s12, %s1403_s12  }
   0x8   : > { %s41_s22 = sadd.s32 1, %s971_s17  ;;  %s45_s23 = sadd.s32 1, %s975_s18 }
   0x9   : > { %p43_p0 = scmp.ge.s32.totalorder %s41_s22, 8  ;;  %s58_s24 = sadd.s32 1, %s959_s14 }
   0xa   : > { %p65_p1 = scmp.ne.s32.totalorder %s959_s14, %s955_s13  ;;  %p66_p2 = scmp.eq.s32.totalorder %s979_s19, 0 }
   0xb   : > { %s1411_s22 = smov (%p43_p0, %s41_s22), 0  ;;  %s1413_s23 = smov (!%p43_p0, %s45_s23), %s975_s18 }
   0xc   : > { %1394 = sst [smem:[#allocation9_spill]] %s1411_s22  ;;  %s52_s25 = ssub.s32 %s971_s17, %s1411_s22 }
   0xd   : > { %p1061_p3 = por %p66_p2, %p65_p1  ;;  %p47_p4 = scmp.ge.s32.totalorder %s1413_s23, 2 }
   0xe   : > { %p71_p5 = scmp.ne.s32.totalorder %s955_s13, %s951_s12  ;;  %p72_p6 = scmp.eq.s32.totalorder %s699_s20, 0 }
   0xf   : > { %p141_p7 = scmp.eq.s32.totalorder %s699_s20, 15  ;;  %s1415_s23 = smov (%p47_p4, %s1413_s23), 0 }
  0x10   : > { %1396 = sst [smem:[#allocation10_spill]] %s1415_s23  ;;  %p1069_p8 = por %p72_p6, %p71_p5 }
  0x11   : > { %p1073_p9 = por %p141_p7, %p65_p1  ;;  %s51_s29 = ssub.s32 %s975_s18, %s1415_s23 }
  0x12   : > { %p147_p10 = scmp.eq.s32.totalorder %s700_s21, 15  ;;  %s53_s30 = sor.u32 %s52_s25, %s51_s29 }
  0x13   : > { %p56_p11 = scmp.eq.s32.totalorder %s53_s30, 0  ;;  %p784_p13 = scmp.lt.s32.totalorder %s979_s19, 16 }
  0x14   : > { %p1079_p12 = por %p147_p10, %p71_p5  ;;  %s173_s5 = sand.u32 1, %s959_s14  }
  0x15   : > { %s1086_s6 = scalar_select %p56_p11, %s959_s14, %s58_s24  }
  0x16   : > { %s703_s7 = sshll.u32 %s173_s5, 7  ;;  %s704_s8 = sshll.u32 %s971_s17, 4 }
  0x17   : > { %s705_s9 = sshll.u32 %s975_s18, 7  ;;  %s177_s10 = scalar_lea.vmem [#allocation3], %s703_s7 }
  0x18   : > { %s190_s11 = sshll.u32 %s177_s10, 4  ;;  %s187_s20 = sadd.s32 %s705_s9, %s704_s8  ;;  %s191_s11 = int_to_ptr.vmem [resolvable:$true] %s190_s11 }
  0x19   : > { %s706_s23 = sshll.u32 %s187_s20, 7  ;;  %p1092_p0 = pnand %p784_p13, %p1061_p3 }
  0x1a   : > { %s189_s30 = scalar_lea.hbm %s1388_s0, %s706_s23  ;;  %s174_s24 = scalar_lea.sflag [#allocation4], %s173_s5 }
  0x1b   : > { %p857_p1 = pneg %p1092_p0  ;;  %s868_s22 = scalar_lea.vmem %s191_s11, 2048 }
  0x1c   : > { %p869_p2 = scmp.ne.s32.totalorder %s191_s11, %s868_s22  ;;  %s981_s7 = smov [#allocation3]  }
  0x1d   : > { %s873_s8 = sshll.u32 %s981_s7, 4  ;;  %s874_s8 = int_to_ptr.vmem [resolvable:$false] %s873_s8 }
  0x1e   : > { %p871_p4 = pnand %p869_p2, %p857_p1  ;;  %s875_s26 = scalar_lea.vmem %s874_s8, 4096 }
  0x1f   : > { %p876_p3 = scmp.lt.s32.totalorder %s191_s11, %s874_s8  ;;  %p877_p6 = scmp.lt.s32.totalorder %s875_s26, %s868_s22 }
  0x20   : > { %p872_p5 = pneg %p871_p4 }
  0x21   : > { %p878_p7 = por %p877_p6, %p876_p3 }
  0x23   : > { %p879_p10 = pnand %p878_p7, %p872_p5 }
  0x25   : > { %882 = shalt.err (!%p879_p10)
}
  0x26   : > { %s982_s9 = smov 256   ;;  %s983_s23 = smov 16  }
  0x27   : > { %779 = dma.hbm_to_vmem [thread:$0]  (!%p1092_p0), %s189_s30, 2048, %s191_s11, %s174_s24, %s982_s9, %s982_s9, %s983_s23  }
  0x28   : > { %p707_p11 = scmp.ge.s32.totalorder %s979_s19, 1  ;;  %p198_p13 = scmp.lt.s32.totalorder %s979_s19, 17 }
  0x2a   : > { %p199_p1 = pnand %p707_p11, %p198_p13 }
  0x2b   : > { %s1106_s5 = sand.u32 (!%p199_p1), 1, %s955_s13  }
  0x2c   : > { %202 = sbr.rel (%p199_p1) target bundleno = 332 (0x14c), region = 32  ;;  %s708_s22 = sshll.u32 (!%p199_p1), %s1106_s5, 7 }
  0x2d   : > { %s205_s10 = scalar_lea.sflag (!%p199_p1), [#allocation4], %s1106_s5  ;;  %s1112_s20 = scalar_lea.vmem (!%p199_p1), [#allocation3], %s708_s22 }
  0x31   : > { %942 = dma.done.wait (%p1069_p8), %s205_s10, 2048  }
  0x32   : > { %944 = vsyncadd (%p1069_p8), %s205_s10, 4294965248  ;;  %v321_v0 = vld [vmem:[%s1389_s1 + $0xf8] sm:$0xff]  ;;  %v320_v1 = vld [vmem:[%s1389_s1 + $0xf0] sm:$0xff]  ;;  %vm361_vm0 = vcmask 1043456   ;;  %vm336_vm1 = vcmask 424960   ;;  %vm239_vm2 = vcmask 261120   ;;  %v535_v63 = vlaneseq }
  0x33   : > { %v319_v2 = vld [vmem:[%s1389_s1 + $0xe8] sm:$0xff]  ;;  %368 = vmatprep.subr.mxu0 %v321_v0  ;;  %726 = vmatprep.subr.mxu1 %v321_v0  ;;  %v318_v3 = vld [vmem:[%s1389_s1 + $0xe0] sm:$0xff]  ;;  %v317_v4 = vld [vmem:[%s1389_s1 + $0xd8] sm:$0xff]  ;;  %v984_v62 = vmov 0.0   ;;  %s1293_s25 = scalar_lea.vmem [#allocation6], %s708_s22  ;;  %s721_s22 = sshll.u32 %s963_s15, 4 }
  0x34   : > { %369 = vmatpush1.msra.mxu0 %v320_v1  ;;  %749 = vmatpush1.msra.mxu1 %v320_v1  ;;  %v316_v5 = vld [vmem:[%s1389_s1 + $0xd0] sm:$0xff]  ;;  %v315_v6 = vld [vmem:[%s1389_s1 + $0xc8] sm:$0xff]  ;;  %v314_v7 = vld [vmem:[%s1389_s1 + $0xc0] sm:$0xff]  ;;  %240 = vst.msk [vmem:[#allocation2 + $0x8] sm:$0xff] %vm239_vm2, %v984_v62  ;;  %v536_v0 = vshrl.u32 %v535_v63, 7  ;;  %s722_s29 = sshll.u32 %s967_s16, 7 }
  0x35   : > { %370 = vmatprep.subr.mxu0 %v319_v2  ;;  %727 = vmatprep.subr.mxu1 %v319_v2  ;;  %v313_v8 = vld [vmem:[%s1389_s1 + $0xb8] sm:$0xff]  ;;  %v312_v9 = vld [vmem:[%s1389_s1 + $0xb0] sm:$0xff]  ;;  %v311_v10 = vld [vmem:[%s1389_s1 + $0xa8] sm:$0xff]  ;;  %242 = vst.msk [vmem:[#allocation2 + $0x18] sm:$0xff] %vm239_vm2, %v984_v62  ;;  %s593_s30 = sadd.s32 %s722_s29, %s721_s22  ;;  %s596_s16 = sshll.u32 %s1293_s25, 4  ;;  %s1331_s16 = int_to_ptr.vmem [resolvable:$true] %s596_s16 }
  0x36   : > { %371 = vmatpush1.msra.mxu0 %v318_v3  ;;  %750 = vmatpush1.msra.mxu1 %v318_v3  ;;  %v310_v11 = vld [vmem:[%s1389_s1 + $0xa0] sm:$0xff]  ;;  %v309_v12 = vld [vmem:[%s1389_s1 + $0x98] sm:$0xff]  ;;  %v308_v13 = vld [vmem:[%s1389_s1 + $0x90] sm:$0xff]  ;;  %244 = vst.msk [vmem:[#allocation2 + $0x28] sm:$0xff] %vm239_vm2, %v984_v62  ;;  %v537_v1 = vsub.s32 0, %v536_v0  ;;  %s723_s15 = sshll.u32 %s593_s30, 7 }
  0x37   : > { %372 = vmatprep.subr.mxu0 %v317_v4  ;;  %728 = vmatprep.subr.mxu1 %v317_v4  ;;  %v307_v14 = vld [vmem:[%s1389_s1 + $0x88] sm:$0xff]  ;;  %v306_v15 = vld [vmem:[%s1389_s1 + $0x80] sm:$0xff]  ;;  %v305_v16 = vld [vmem:[%s1389_s1 + $0x78] sm:$0xff]  ;;  %246 = vst.msk [vmem:[#allocation2 + $0x38] sm:$0xff] %vm239_vm2, %v984_v62  ;;  %s1329_s8 = scalar_lea.hbm %s1391_s3, %s723_s15  ;;  %s578_s27 = scalar_lea.sflag [#allocation5], %s1106_s5 }
  0x38   : > { %373 = vmatpush1.msra.mxu0 %v316_v5  ;;  %751 = vmatpush1.msra.mxu1 %v316_v5  ;;  %v304_v17 = vld [vmem:[%s1389_s1 + $0x70] sm:$0xff]  ;;  %v303_v18 = vld [vmem:[%s1389_s1 + $0x68] sm:$0xff]  ;;  %v302_v19 = vld [vmem:[%s1389_s1 + $0x60] sm:$0xff]  ;;  %248 = vst.msk [vmem:[#allocation2 + $0x48] sm:$0xff] %vm239_vm2, %v984_v62  ;;  %s883_s26 = scalar_lea.vmem %s1331_s16, 2048  ;;  %s985_s9 = smov [#allocation6]  }
  0x39   : > { %374 = vmatprep.subr.mxu0 %v315_v6  ;;  %729 = vmatprep.subr.mxu1 %v315_v6  ;;  %v301_v20 = vld [vmem:[%s1389_s1 + $0x58] sm:$0xff]  ;;  %v300_v21 = vld [vmem:[%s1389_s1 + $0x50] sm:$0xff]  ;;  %v299_v22 = vld [vmem:[%s1389_s1 + $0x48] sm:$0xff]  ;;  %250 = vst.msk [vmem:[#allocation2 + $0x58] sm:$0xff] %vm239_vm2, %v984_v62  ;;  %p884_p8 = scmp.ne.s32.totalorder %s1331_s16, %s883_s26  ;;  %s887_s23 = sshll.u32 %s985_s9, 4  ;;  %s888_s23 = int_to_ptr.vmem [resolvable:$false] %s887_s23 }
  0x3a   : > { %375 = vmatpush1.msra.mxu0 %v314_v7  ;;  %752 = vmatpush1.msra.mxu1 %v314_v7  ;;  %v298_v23 = vld [vmem:[%s1389_s1 + $0x40] sm:$0xff]  ;;  %v297_v24 = vld [vmem:[%s1389_s1 + $0x38] sm:$0xff]  ;;  %v296_v25 = vld [vmem:[%s1389_s1 + $0x30] sm:$0xff]  ;;  %252 = vst.msk [vmem:[#allocation2 + $0x68] sm:$0xff] %vm239_vm2, %v984_v62  ;;  %s889_s10 = scalar_lea.vmem %s888_s23, 4096  ;;  %p890_p4 = scmp.lt.s32.totalorder %s1331_s16, %s888_s23 }
  0x3b   : > { %376 = vmatprep.subr.mxu0 %v313_v8  ;;  %730 = vmatprep.subr.mxu1 %v313_v8  ;;  %v295_v26 = vld [vmem:[%s1389_s1 + $0x28] sm:$0xff]  ;;  %v294_v27 = vld [vmem:[%s1389_s1 + $0x20] sm:$0xff]  ;;  %v293_v28 = vld [vmem:[%s1389_s1 + $0x18] sm:$0xff]  ;;  %254 = vst.msk [vmem:[#allocation2 + $0x78] sm:$0xff] %vm239_vm2, %v984_v62  ;;  %p885_p0 = pnand %p884_p8, %p1073_p9  ;;  %p891_p5 = scmp.lt.s32.totalorder %s889_s10, %s883_s26 }
  0x3c   : > { %377 = vmatpush1.msra.mxu0 %v312_v9  ;;  %753 = vmatpush1.msra.mxu1 %v312_v9  ;;  %v292_v29 = vld [vmem:[%s1389_s1 + $0x10] sm:$0xff]  ;;  %v291_v30 = vld [vmem:[%s1389_s1 + $0x8] sm:$0xff]  ;;  %v290_v31 = vld [vmem:[%s1389_s1] sm:$0xff] }
  0x3d   : > { %378 = vmatprep.subr.mxu0 %v311_v10  ;;  %731 = vmatprep.subr.mxu1 %v311_v10  ;;  %v335_v32 = vld [vmem:[%s1389_s1 + $0x168] sm:$0xf]  ;;  %v334_v33 = vld [vmem:[%s1389_s1 + $0x160] sm:$0xf]  ;;  %v333_v34 = vld [vmem:[%s1389_s1 + $0x158] sm:$0xff]  ;;  %p886_p2 = pneg %p885_p0  ;;  %p892_p3 = por %p891_p5, %p890_p4 }
  0x3e   : > { %379 = vmatpush1.msra.mxu0 %v310_v11  ;;  %754 = vmatpush1.msra.mxu1 %v310_v11  ;;  %v332_v35 = vld [vmem:[%s1389_s1 + $0x150] sm:$0xff]  ;;  %v331_v36 = vld [vmem:[%s1389_s1 + $0x148] sm:$0xff]  ;;  %v330_v37 = vld [vmem:[%s1389_s1 + $0x140] sm:$0xff] }
  0x3f   : > { %380 = vmatprep.subr.mxu0 %v309_v12  ;;  %732 = vmatprep.subr.mxu1 %v309_v12  ;;  %v329_v38 = vld [vmem:[%s1389_s1 + $0x138] sm:$0xff]  ;;  %v328_v39 = vld [vmem:[%s1389_s1 + $0x130] sm:$0xff]  ;;  %v327_v40 = vld [vmem:[%s1389_s1 + $0x128] sm:$0xff]  ;;  %p893_p6 = pnand %p892_p3, %p886_p2 }
  0x40   : > { %381 = vmatpush1.msra.mxu0 %v308_v13  ;;  %755 = vmatpush1.msra.mxu1 %v308_v13  ;;  %v326_v41 = vld [vmem:[%s1389_s1 + $0x120] sm:$0xff]  ;;  %v325_v42 = vld [vmem:[%s1389_s1 + $0x118] sm:$0xff]  ;;  %v324_v43 = vld [vmem:[%s1389_s1 + $0x110] sm:$0xff] }
  0x41   : > { %382 = vmatprep.subr.mxu0 %v307_v14  ;;  %733 = vmatprep.subr.mxu1 %v307_v14  ;;  %v323_v44 = vld [vmem:[%s1389_s1 + $0x108] sm:$0xff]  ;;  %v322_v45 = vld [vmem:[%s1389_s1 + $0x100] sm:$0xff]  ;;  %v274_v50 = vld [vmem:[%s1112_s20 + $0x18] sm:$0xff] }
  0x42   : > { %383 = vmatpush1.msra.mxu0 %v306_v15  ;;  %756 = vmatpush1.msra.mxu1 %v306_v15  ;;  %v272_v46 = vld [vmem:[%s1112_s20 + $0x8] sm:$0xff]  ;;  %v271_v48 = vld [vmem:[%s1112_s20] sm:$0xff]  ;;  %v282_v51 = vld [vmem:[%s1112_s20 + $0x58] sm:$0xff] }
  0x43   : > { %384 = vmatprep.subr.mxu0 %v305_v16  ;;  %734 = vmatprep.subr.mxu1 %v305_v16  ;;  %v280_v47 = vld [vmem:[%s1112_s20 + $0x48] sm:$0xff]  ;;  %v279_v49 = vld [vmem:[%s1112_s20 + $0x40] sm:$0xff]  ;;  %v273_v52 = vld [vmem:[%s1112_s20 + $0x10] sm:$0xff] }
  0x44   : > { %385 = vmatpush1.msra.mxu0 %v304_v17  ;;  %757 = vmatpush1.msra.mxu1 %v304_v17  ;;  %v281_v53 = vld [vmem:[%s1112_s20 + $0x50] sm:$0xff]  ;;  %v276_v54 = vld [vmem:[%s1112_s20 + $0x28] sm:$0xff]  ;;  %v275_v56 = vld [vmem:[%s1112_s20 + $0x20] sm:$0xff] }
  0x45   : > { %386 = vmatprep.subr.mxu0 %v303_v18  ;;  %735 = vmatprep.subr.mxu1 %v303_v18  ;;  %v284_v55 = vld [vmem:[%s1112_s20 + $0x68] sm:$0xff]  ;;  %v283_v57 = vld [vmem:[%s1112_s20 + $0x60] sm:$0xff]  ;;  %v278_v58 = vld [vmem:[%s1112_s20 + $0x38] sm:$0xff]  ;;  %v541_v18 = vsub.s32 1, %v536_v0 }
  0x46   : > { %387 = vmatpush1.msra.mxu0 %v302_v19  ;;  %758 = vmatpush1.msra.mxu1 %v302_v19  ;;  %v286_v59 = vld [vmem:[%s1112_s20 + $0x78] sm:$0xff]  ;;  %v277_v60 = vld [vmem:[%s1112_s20 + $0x30] sm:$0xff]  ;;  %v533_v2 = vld [vmem:[%s1390_s2] sm:$0x3] }
  0x47   : > { %388 = vmatprep.subr.mxu0 %v301_v20  ;;  %736 = vmatprep.subr.mxu1 %v301_v20  ;;  %v285_v61 = vld [vmem:[%s1112_s20 + $0x70] sm:$0xff]  ;;  %v538_v3 = vrot.slane %v533_v2, %v537_v1  ;;  %v256_v6 = vld [vmem:[#allocation2 + $0x8] sm:$0xff]  ;;  %v258_v16 = vld [vmem:[#allocation2 + $0x18] sm:$0xff] }
  0x48   : > { %389 = vmatpush1.msra.mxu0 %v300_v21  ;;  %759 = vmatpush1.msra.mxu1 %v300_v21  ;;  %v264_v7 = vld [vmem:[#allocation2 + $0x48] sm:$0xff]  ;;  %v266_v17 = vld [vmem:[#allocation2 + $0x58] sm:$0xff] }
  0x49   : > { %390 = vmatprep.subr.mxu0 %v299_v22  ;;  %737 = vmatprep.subr.mxu1 %v299_v22 }
  0x4a   : > { %391 = vmatpush1.msra.mxu0 %v298_v23  ;;  %760 = vmatpush1.msra.mxu1 %v298_v23 }
  0x4b   : > { %392 = vmatprep.subr.mxu0 %v297_v24  ;;  %738 = vmatprep.subr.mxu1 %v297_v24 }
  0x4c   : > { %393 = vmatpush1.msra.mxu0 %v296_v25  ;;  %761 = vmatpush1.msra.mxu1 %v296_v25 }
  0x4d   : > { %394 = vmatprep.subr.mxu0 %v295_v26  ;;  %739 = vmatprep.subr.mxu1 %v295_v26 }
  0x4e   : > { %395 = vmatpush1.msra.mxu0 %v294_v27  ;;  %762 = vmatpush1.msra.mxu1 %v294_v27  ;;  %v260_v27 = vld [vmem:[#allocation2 + $0x28] sm:$0xff] }
  0x4f   : > { %396 = vmatprep.subr.mxu0 %v293_v28  ;;  %740 = vmatprep.subr.mxu1 %v293_v28  ;;  %v268_v28 = vld [vmem:[#allocation2 + $0x68] sm:$0xff] }
  0x50   : > { %397 = vmatpush1.msra.mxu0 %v292_v29  ;;  %763 = vmatpush1.msra.mxu1 %v292_v29  ;;  %v542_v29 = vrot.slane %v533_v2, %v541_v18 }
  0x51   : > { %398 = vmatprep.subr.mxu0 %v291_v30  ;;  %741 = vmatprep.subr.mxu1 %v291_v30 }
  0x52   : > { %399 = vmatpush1.msra.mxu0 %v290_v31  ;;  %764 = vmatpush1.msra.mxu1 %v290_v31 }
  0x53   : > { %710 = vmatprep.subr.msk.mxu0 %vm361_vm0, %v335_v32  ;;  %742 = vmatprep.subr.msk.mxu1 %vm361_vm0, %v335_v32 }
  0x54   : > { %711 = vmatpush2.msk.msra.mxu0 %vm361_vm0, %v334_v33  ;;  %765 = vmatpush2.msk.msra.mxu1 %vm361_vm0, %v334_v33 }
  0x55   : > { %420 = vmatprep.subr.mxu0 %v333_v34  ;;  %743 = vmatprep.subr.mxu1 %v333_v34 }
  0x56   : > { %421 = vmatpush2.msra.mxu0 %v332_v35  ;;  %766 = vmatpush2.msra.mxu1 %v332_v35 }
  0x57   : > { %422 = vmatprep.subr.mxu0 %v331_v36  ;;  %744 = vmatprep.subr.mxu1 %v331_v36  ;;  %v262_v36 = vld [vmem:[#allocation2 + $0x38] sm:$0xff] }
  0x58   : > { %423 = vmatpush2.msra.mxu0 %v330_v37  ;;  %767 = vmatpush2.msra.mxu1 %v330_v37 }
  0x59   : > { %424 = vmatprep.subr.mxu0 %v329_v38  ;;  %745 = vmatprep.subr.mxu1 %v329_v38 }
  0x5a   : > { %425 = vmatpush2.msra.mxu0 %v328_v39  ;;  %768 = vmatpush2.msra.mxu1 %v328_v39 }
  0x5b   : > { %426 = vmatprep.subr.mxu0 %v327_v40  ;;  %746 = vmatprep.subr.mxu1 %v327_v40 }
  0x5c   : > { %427 = vmatpush2.msra.mxu0 %v326_v41  ;;  %769 = vmatpush2.msra.mxu1 %v326_v41  ;;  %v270_v41 = vld [vmem:[#allocation2 + $0x78] sm:$0xff] }
  0x5d   : > { %428 = vmatprep.subr.mxu0 %v325_v42  ;;  %747 = vmatprep.subr.mxu1 %v325_v42 }
  0x5e   : > { %429 = vmatpush2.msra.mxu0 %v324_v43  ;;  %770 = vmatpush2.msra.mxu1 %v324_v43 }
  0x5f   : > { %430 = vmatprep.subr.mxu0 %v323_v44  ;;  %748 = vmatprep.subr.mxu1 %v323_v44 }
  0x60   : > { %431 = vmatpush2.msra.mxu0 %v322_v45  ;;  %771 = vmatpush2.msra.mxu1 %v322_v45 }
  0x61   : > { %712 = vmatprep.mubr.msk.f32.mxu0 %vm336_vm1, %v272_v46  ;;  %716 = vmatprep.mubr.msk.f32.mxu1 %vm336_vm1, %v280_v47 }
  0x62   : > { %433 = vmatmul.mubr.f32.vlgmr.msra.gmra.mxu0 %v271_v48  ;;  %457 = vmatmul.mubr.f32.vlgmr.msra.gmra.mxu1 %v279_v49 }
  0x63   : > { %713 = vmatprep.mubr.msk.f32.mxu0 %vm336_vm1, %v274_v50  ;;  %717 = vmatprep.mubr.msk.f32.mxu1 %vm336_vm1, %v282_v51 }
  0x66   : > { %439 = vmatmul.mubr.f32.gmra.mxu0 %v273_v52  ;;  %463 = vmatmul.mubr.f32.gmra.mxu1 %v281_v53 }
  0x67   : > { %714 = vmatprep.mubr.msk.f32.mxu0 %vm336_vm1, %v276_v54  ;;  %718 = vmatprep.mubr.msk.f32.mxu1 %vm336_vm1, %v284_v55 }
  0x6a   : > { %445 = vmatmul.mubr.f32.gmra.mxu0 %v275_v56  ;;  %469 = vmatmul.mubr.f32.gmra.mxu1 %v283_v57 }
  0x6b   : > { %715 = vmatprep.mubr.msk.f32.mxu0 %vm336_vm1, %v278_v58  ;;  %719 = vmatprep.mubr.msk.f32.mxu1 %vm336_vm1, %v286_v59 }
  0x6e   : > { %451 = vmatmul.mubr.f32.gmra.mxu0 %v277_v60  ;;  %475 = vmatmul.mubr.f32.gmra.mxu1 %v285_v61 }
 0x122   : > { %v434_v4 = vpop.f32.mrf.mxu0  ;;  %v458_v5 = vpop.f32.mrf.mxu1 }
 0x123   : > { %v545_v10 = vadd.f32 %v538_v3, %v434_v4  ;;  %v553_v11 = vadd.f32 %v538_v3, %v458_v5 }
 0x124   : > { %v436_v8 = vpop.f32.mrf.mxu0  ;;  %v460_v9 = vpop.f32.mrf.mxu1 }
 0x125   : > { %v482_v12 = vadd.f32 %v436_v8, %v256_v6  ;;  %v490_v13 = vadd.f32 %v460_v9, %v264_v7  ;;  %561 = vst [vmem:[%s1293_s25] sm:$0xff] %v545_v10  ;;  %569 = vst [vmem:[%s1293_s25 + $0x40] sm:$0xff] %v553_v11 }
 0x126   : > { %v440_v14 = vpop.f32.mrf.mxu0  ;;  %v464_v15 = vpop.f32.mrf.mxu1 }
 0x127   : > { %499 = vst.msk [vmem:[#allocation2 + $0x8] sm:$0xff] %vm239_vm2, %v482_v12  ;;  %507 = vst.msk [vmem:[#allocation2 + $0x48] sm:$0xff] %vm239_vm2, %v490_v13  ;;  %v547_v21 = vadd.f32 %v538_v3, %v440_v14  ;;  %v555_v22 = vadd.f32 %v538_v3, %v464_v15 }
 0x128   : > { %v442_v19 = vpop.f32.mrf.mxu0  ;;  %v466_v20 = vpop.f32.mrf.mxu1 }
 0x129   : > { %v484_v23 = vadd.f32 %v442_v19, %v258_v16  ;;  %v492_v24 = vadd.f32 %v466_v20, %v266_v17  ;;  %563 = vst [vmem:[%s1293_s25 + $0x10] sm:$0xff] %v547_v21  ;;  %571 = vst [vmem:[%s1293_s25 + $0x50] sm:$0xff] %v555_v22 }
 0x12a   : > { %v446_v25 = vpop.f32.mrf.mxu0  ;;  %v470_v26 = vpop.f32.mrf.mxu1 }
 0x12b   : > { %501 = vst.msk [vmem:[#allocation2 + $0x18] sm:$0xff] %vm239_vm2, %v484_v23  ;;  %509 = vst.msk [vmem:[#allocation2 + $0x58] sm:$0xff] %vm239_vm2, %v492_v24  ;;  %v549_v32 = vadd.f32 %v538_v3, %v446_v25  ;;  %v557_v33 = vadd.f32 %v538_v3, %v470_v26 }
 0x12c   : > { %v448_v30 = vpop.f32.mrf.mxu0  ;;  %v472_v31 = vpop.f32.mrf.mxu1 }
 0x12d   : > { %v486_v34 = vadd.f32 %v448_v30, %v260_v27  ;;  %v494_v35 = vadd.f32 %v472_v31, %v268_v28  ;;  %565 = vst [vmem:[%s1293_s25 + $0x20] sm:$0xff] %v549_v32  ;;  %573 = vst [vmem:[%s1293_s25 + $0x60] sm:$0xff] %v557_v33 }
 0x12e   : > { %v518_v37 = vld [vmem:[#allocation2 + $0x8] sm:$0xff]  ;;  %v452_v39 = vpop.f32.mrf.mxu0  ;;  %v476_v40 = vpop.f32.mrf.mxu1 }
 0x12f   : > { %v526_v38 = vld [vmem:[#allocation2 + $0x48] sm:$0xff]  ;;  %v546_v42 = vadd.f32 %v542_v29, %v518_v37  ;;  %503 = vst.msk [vmem:[#allocation2 + $0x28] sm:$0xff] %vm239_vm2, %v486_v34  ;;  %511 = vst.msk [vmem:[#allocation2 + $0x68] sm:$0xff] %vm239_vm2, %v494_v35  ;;  %v551_v46 = vadd.f32 %v538_v3, %v452_v39  ;;  %v559_v47 = vadd.f32 %v538_v3, %v476_v40 }
 0x130   : > { %v554_v43 = vadd.f32 %v542_v29, %v526_v38  ;;  %v454_v44 = vpop.f32.mrf.mxu0  ;;  %v478_v45 = vpop.f32.mrf.mxu1 }
 0x131   : > { %562 = vst.msk [vmem:[%s1293_s25 + $0x8] sm:$0xff] %vm239_vm2, %v546_v42  ;;  %v488_v48 = vadd.f32 %v454_v44, %v262_v36  ;;  %v496_v49 = vadd.f32 %v478_v45, %v270_v41  ;;  %567 = vst [vmem:[%s1293_s25 + $0x30] sm:$0xff] %v551_v46 }
 0x132   : > { %570 = vst.msk [vmem:[%s1293_s25 + $0x48] sm:$0xff] %vm239_vm2, %v554_v43  ;;  %v520_v50 = vld [vmem:[#allocation2 + $0x18] sm:$0xff]  ;;  %575 = vst [vmem:[%s1293_s25 + $0x70] sm:$0xff] %v559_v47 }
 0x133   : > { %v528_v51 = vld [vmem:[#allocation2 + $0x58] sm:$0xff]  ;;  %v548_v52 = vadd.f32 %v542_v29, %v520_v50  ;;  %505 = vst.msk [vmem:[#allocation2 + $0x38] sm:$0xff] %vm239_vm2, %v488_v48  ;;  %513 = vst.msk [vmem:[#allocation2 + $0x78] sm:$0xff] %vm239_vm2, %v496_v49 }
 0x134   : > { %v556_v53 = vadd.f32 %v542_v29, %v528_v51 }
 0x135   : > { %564 = vst.msk [vmem:[%s1293_s25 + $0x18] sm:$0xff] %vm239_vm2, %v548_v52 }
 0x136   : > { %572 = vst.msk [vmem:[%s1293_s25 + $0x58] sm:$0xff] %vm239_vm2, %v556_v53  ;;  %v522_v54 = vld [vmem:[#allocation2 + $0x28] sm:$0xff] }
 0x137   : > { %v530_v55 = vld [vmem:[#allocation2 + $0x68] sm:$0xff]  ;;  %v550_v56 = vadd.f32 %v542_v29, %v522_v54 }
 0x138   : > { %v558_v57 = vadd.f32 %v542_v29, %v530_v55 }
 0x139   : > { %566 = vst.msk [vmem:[%s1293_s25 + $0x28] sm:$0xff] %vm239_vm2, %v550_v56 }
 0x13a   : > { %574 = vst.msk [vmem:[%s1293_s25 + $0x68] sm:$0xff] %vm239_vm2, %v558_v57  ;;  %v524_v58 = vld [vmem:[#allocation2 + $0x38] sm:$0xff] }
 0x13b   : > { %v532_v59 = vld [vmem:[#allocation2 + $0x78] sm:$0xff]  ;;  %v552_v60 = vadd.f32 %v542_v29, %v524_v58 }
 0x13c   : > { %v560_v61 = vadd.f32 %v542_v29, %v532_v59 }
 0x13d   : > { %568 = vst.msk [vmem:[%s1293_s25 + $0x38] sm:$0xff] %vm239_vm2, %v552_v60 }
 0x13e   : > { %576 = vst.msk [vmem:[%s1293_s25 + $0x78] sm:$0xff] %vm239_vm2, %v560_v61 }
 0x13f   : > { %896 = shalt.err (!%p893_p6)
}
 0x140   : > { %s897_s11 = scalar_lea.hbm %s1329_s8, 2048  ;;  %s901_s25 = scalar_lea.hbm %s1391_s3, 32768 }
 0x141   : > { %p898_p7 = scmp.ne.s32.totalorder %s1329_s8, %s897_s11  ;;  %p902_p13 = scmp.lt.s32.totalorder %s1329_s8, %s1391_s3 }
 0x142   : > { %p903_p1 = scmp.lt.s32.totalorder %s901_s25, %s897_s11 }
 0x143   : > { %p899_p10 = pnand %p898_p7, %p1073_p9 }
 0x144   : > { %p904_p8 = por %p903_p1, %p902_p13 }
 0x145   : > { %p900_p11 = pneg %p899_p10 }
 0x147   : > { %p905_p0 = pnand %p904_p8, %p900_p11 }
 0x149   : > { %908 = shalt.err (!%p905_p0)
}
 0x14a   : > { %s986_s30 = smov 256   ;;  %s987_s15 = smov 16  }
 0x14b   : > { %774 = dma.vmem_to_hbm [thread:$0]  (%p1073_p9), %s1331_s16, 2048, %s1329_s8, %s578_s27, %s986_s30, %s986_s30, %s987_s15  }
 0x14c PF: > { %p785_p2 = scmp.ge.s32.totalorder %s979_s19, 2  ;;  %s611_s24 = sand.u32 1, %s951_s12  }
 0x14d   : > { %s612_s7 = scalar_lea.sflag [#allocation5], %s611_s24 }
 0x14e   : > { %p781_p4 = pnand %p785_p2, %p1079_p12 }
 0x150   : > { %p782_p5 = pneg %p781_p4 }
 0x152   : > { %946 = dma.done.wait (%p782_p5), %s612_s7, 2048  }
 0x153   : > { %948 = vsyncadd (%p782_p5), %s612_s7, 4294965248  ;;  %s19_s19 = sadd.s32 1, %s979_s19   ;;  %s1401_s28 = sld [smem:[#allocation9_spill]] }
 0x154   : > { %p16_p3 = scmp.ge.s32.totalorder %s19_s19, 18   ;;  %s1402_s5 = sld [smem:[#allocation10_spill]] }
 0x155   : > { %s1403_s12 = smov %s955_s13  ;;  %s1404_s13 = smov %s959_s14 }
 0x156   : > { %s1405_s14 = smov %s1086_s6  ;;  %s1406_s15 = smov %s971_s17 }
 0x157   : > { %s1407_s16 = smov %s975_s18  ;;  %18 = sbr.rel (!%p16_p3) target bundleno = 7 (0x7), region = 86 }
 0x159   : > { %s1408_s17 = smov %s1401_s28 }
 0x15a   : > { %s1409_s18 = smov %s1402_s5 }
 0x15c   :  { %617 = vsyncpa [#allocation4], 1 }
 0x15d   :  { %619 = vsyncpa [#allocation4 + $0x1], 1 }
 0x15e   :  { %620 = vsyncpa [#allocation5], 1 }
 0x15f   :  { %622 = vsyncpa [#allocation5 + $0x1], 1 }

</bundles_post_ra>
